<compile_context>
chip_gen: v6e
topology: v6e:2x2x1
jax: 0.10.0
libtpu: 0.0.40
codegen_flags: <defaults>
</compile_context>

<pallas_src>
import functools
import math

import jax
import jax.numpy as jnp
from jax.experimental import pallas as pl
from jax.experimental.pallas import tpu as pltpu


# ----------------------------------------------------------------------------
# Generation-aware VMEM / block sizing
# ----------------------------------------------------------------------------
def _vmem_capacity_bytes():
    try:
        info = pltpu.get_tpu_info()
        cap = getattr(info, "vmem_capacity_bytes", None)
        if cap:
            return int(cap)
    except Exception:
        pass
    return 64 * 1024 * 1024  # conservative (v7x per-core VMEM)


def _pick_block_q(N, Cz, B, block_q):
    """Derive the query block so the double-buffered bf16 z block fits VMEM."""
    cap = _vmem_capacity_bytes()
    vmem_limit = min(int(cap * 0.85), 112 * 1024 * 1024)   # leave Mosaic headroom
    czp = ((max(Cz, 1) + 127) // 128) * 128                # z lane padding
    budget = int(vmem_limit * 0.55)                        # z double-buffer budget
    bq = min(block_q, N)
    if bq < N:
        bq = max(8, (bq // 8) * 8)
    while bq > 8 and 2 * bq * N * czp * 2 > budget:        # 2 bufs * bf16 bytes
        bq = max(8, bq // 2)
    # v7x megacore: keep >= 2 grid steps so both TensorCores get work.
    if B * ((N + bq - 1) // bq) < 2 and N >= 16:
        half = (N + 1) // 2
        bq = max(8, ((half + 7) // 8) * 8)
    return bq, vmem_limit


# ----------------------------------------------------------------------------
# Linear: row-blocked, pipelined
# ----------------------------------------------------------------------------
def _linear_kernel(x_ref, w_ref, b_ref, o_ref, *, relu=False):
    y = jnp.dot(x_ref[...], w_ref[...], preferred_element_type=jnp.float32)
    y = y + b_ref[...]
    if relu:
        y = jnp.maximum(y, 0.0)
    o_ref[...] = y


def linear_pallas(x, w, b, relu=False, block_m=1024):
    """x: [..., K] @ w: [K, N] + b: [N] -> [..., N], tiled over rows."""
    lead = x.shape[:-1]
    K = x.shape[-1]
    M = int(math.prod(lead)) if lead else 1
    N = w.shape[1]
    bm = M if M <= block_m else block_m          # block_m is a multiple of 8
    out = pl.pallas_call(
        functools.partial(_linear_kernel, relu=relu),
        grid=(pl.cdiv(M, bm),),
        in_specs=[pl.BlockSpec((bm, K), lambda i: (i, 0)),
                  pl.BlockSpec((K, N), lambda i: (0, 0)),
                  pl.BlockSpec((1, N), lambda i: (0, 0))],
        out_specs=pl.BlockSpec((bm, N), lambda i: (i, 0)),
        out_shape=jax.ShapeDtypeStruct((M, N), jnp.float32),
        compiler_params=pltpu.CompilerParams(
            dimension_semantics=("parallel",)),
    )(x.reshape(M, K), w, b.reshape(1, N))
    return out.reshape(lead + (N,))


# ----------------------------------------------------------------------------
# Fused IPA output linear + mask + residual + LayerNorm (one HBM round trip)
# ----------------------------------------------------------------------------
def _ipa_out_kernel(x_ref, w_ref, b_ref, s_ref, m_ref, g_ref, beta_ref, o_ref):
    e = jnp.dot(x_ref[...], w_ref[...], preferred_element_type=jnp.float32)
    e = e + b_ref[...]
    y = s_ref[...] + e * m_ref[...]
    mu = jnp.mean(y, axis=-1, keepdims=True)
    var = jnp.mean((y - mu) ** 2, axis=-1, keepdims=True)
    o_ref[...] = (y - mu) * jax.lax.rsqrt(var + 1e-5) * g_ref[...] + beta_ref[...]


def ipa_out_residual_ln(cat, wout, bout, s, mask, gamma, beta, block_m=512):
    B, N, Din = cat.shape
    c_s = wout.shape[1]
    M = B * N
    bm = M if M <= block_m else block_m
    out = pl.pallas_call(
        _ipa_out_kernel,
        grid=(pl.cdiv(M, bm),),
        in_specs=[pl.BlockSpec((bm, Din), lambda i: (i, 0)),
                  pl.BlockSpec((Din, c_s), lambda i: (0, 0)),
                  pl.BlockSpec((1, c_s), lambda i: (0, 0)),
                  pl.BlockSpec((bm, c_s), lambda i: (i, 0)),
                  pl.BlockSpec((bm, 1), lambda i: (i, 0)),
                  pl.BlockSpec((1, c_s), lambda i: (0, 0)),
                  pl.BlockSpec((1, c_s), lambda i: (0, 0))],
        out_specs=pl.BlockSpec((bm, c_s), lambda i: (i, 0)),
        out_shape=jax.ShapeDtypeStruct((M, c_s), jnp.float32),
        compiler_params=pltpu.CompilerParams(
            dimension_semantics=("parallel",)),
    )(cat.reshape(M, Din), wout, bout.reshape(1, c_s), s.reshape(M, c_s),
      mask.reshape(M, 1), gamma.reshape(1, c_s), beta.reshape(1, c_s))
    return out.reshape(B, N, c_s)


# ----------------------------------------------------------------------------
# Fused StructureModuleTransition: 3 linears (+ReLU) + residual + LayerNorm
# ----------------------------------------------------------------------------
def _transition_kernel(x_ref, w1_ref, b1_ref, w2_ref, b2_ref, w3_ref, b3_ref,
                       g_ref, beta_ref, o_ref):
    x = x_ref[...]
    t = jnp.dot(x, w1_ref[...], preferred_element_type=jnp.float32) + b1_ref[...]
    t = jnp.maximum(t, 0.0)
    t = jnp.dot(t, w2_ref[...], preferred_element_type=jnp.float32) + b2_ref[...]
    t = jnp.maximum(t, 0.0)
    t = jnp.dot(t, w3_ref[...], preferred_element_type=jnp.float32) + b3_ref[...]
    y = t + x
    mu = jnp.mean(y, axis=-1, keepdims=True)
    var = jnp.mean((y - mu) ** 2, axis=-1, keepdims=True)
    o_ref[...] = (y - mu) * jax.lax.rsqrt(var + 1e-5) * g_ref[...] + beta_ref[...]


def transition_pallas(s, w1, b1, w2, b2, w3, b3, gamma, beta, block_m=512):
    B, N, C = s.shape
    M = B * N
    bm = M if M <= block_m else block_m
    out = pl.pallas_call(
        _transition_kernel,
        grid=(pl.cdiv(M, bm),),
        in_specs=[pl.BlockSpec((bm, C), lambda i: (i, 0)),
                  pl.BlockSpec((C, C), lambda i: (0, 0)),
                  pl.BlockSpec((1, C), lambda i: (0, 0)),
                  pl.BlockSpec((C, C), lambda i: (0, 0)),
                  pl.BlockSpec((1, C), lambda i: (0, 0)),
                  pl.BlockSpec((C, C), lambda i: (0, 0)),
                  pl.BlockSpec((1, C), lambda i: (0, 0)),
                  pl.BlockSpec((1, C), lambda i: (0, 0)),
                  pl.BlockSpec((1, C), lambda i: (0, 0))],
        out_specs=pl.BlockSpec((bm, C), lambda i: (i, 0)),
        out_shape=jax.ShapeDtypeStruct((M, C), jnp.float32),
        compiler_params=pltpu.CompilerParams(
            dimension_semantics=("parallel",)),
    )(s.reshape(M, C), w1, b1.reshape(1, C), w2, b2.reshape(1, C),
      w3, b3.reshape(1, C), gamma.reshape(1, C), beta.reshape(1, C))
    return out.reshape(B, N, C)


# ----------------------------------------------------------------------------
# IPA attention kernel: grid = (batch, query-block), heads folded inside
# ----------------------------------------------------------------------------
def _ipa_attn_kernel(hw_ref, bb_ref, wbT_ref, mk_ref, mq_ref,
                     q_ref, k_ref, v_ref, qpt_ref, kpt_ref, vpt_ref, z_ref,
                     out_ref, *, H, C, Pq, Pv, Cz, inf):
    Nq = q_ref.shape[0]
    Nk = k_ref.shape[0]

    z = z_ref[...]                                            # [Nq, Nk, Cz] bf16

    # Pair bias for all heads: one flat streamed matmul over Nq*Nk rows
    # (fully de-batched; wb is query-independent so it is held once as the
    #  MXU weight tile instead of re-pushed per query row).
    z2 = z.reshape(Nq * Nk, Cz)
    bz_all = jax.lax.dot_general(
        wbT_ref[...], z2, (((1,), (1,)), ((), ())),
        preferred_element_type=jnp.float32)                   # [H, Nq*Nk]
    bz_all = bz_all.reshape(H, Nq, Nk)                        # per-head major slice

    # Mask bias built in-kernel from the 1-D mask (no [B,N,N] materialization).
    mask_k = mk_ref[...].astype(jnp.float32)                  # [1, Nk]
    mask_q = mq_ref[...].astype(jnp.float32)                  # [Nq, 1]
    mask_bias = inf * (mask_q * mask_k - 1.0)                 # [Nq, Nk]

    scale_q = 1.0 / math.sqrt(3.0 * C)
    scale_b = math.sqrt(1.0 / 3.0)
    ones_q = jnp.ones((Nq, 1), jnp.bfloat16)
    ones_k = jnp.ones((Nk, 1), jnp.bfloat16)

    o_parts, opt_parts, p_parts = [], [], []
    for h in range(H):
        qh = q_ref[:, h * C:(h + 1) * C]                      # [Nq, C]  bf16
        kh = k_ref[:, h * C:(h + 1) * C]                      # [Nk, C]  bf16
        vh = v_ref[:, h * C:(h + 1) * C]                      # [Nk, C]  bf16
        qph = qpt_ref[:, h * 3 * Pq:(h + 1) * 3 * Pq]         # [Nq, 3*Pq] bf16
        kph = kpt_ref[:, h * 3 * Pq:(h + 1) * 3 * Pq]         # [Nk, 3*Pq] bf16
        vph = vpt_ref[:, h * 3 * Pv:(h + 1) * 3 * Pv]         # [Nk, 3*Pv] bf16

        w_h = hw_ref[h]                                       # SMEM f32 scalar
        qp32 = qph.astype(jnp.float32)
        kp32 = kph.astype(jnp.float32)
        qsq = jnp.sum(qp32 * qp32, axis=-1, keepdims=True)    # [Nq, 1] f32
        ksq = jnp.sum(kp32 * kp32, axis=-1, keepdims=True)    # [Nk, 1] f32

        # One fused bf16 MXU matmul: scalar attn + point attn + both squared
        # norm terms appended as extra contraction columns (no ksq transpose).
        q_t = jnp.concatenate(
            [qh * scale_q,
             (qp32 * w_h).astype(jnp.bfloat16),
             (-0.5 * w_h * qsq).astype(jnp.bfloat16),
             ones_q], axis=-1)
        k_t = jnp.concatenate(
            [kh, kph, ones_k,
             (-0.5 * w_h * ksq).astype(jnp.bfloat16)], axis=-1)
        a = jax.lax.dot_general(q_t, k_t, (((1,), (1,)), ((), ())),
                                preferred_element_type=jnp.float32)  # [Nq, Nk]

        a = a + scale_b * (bz_all[h] + bb_ref[h]) + mask_bias

        a = a - jnp.max(a, axis=-1, keepdims=True)
        e = jnp.exp(a)
        p = e * pl.reciprocal(jnp.sum(e, axis=-1, keepdims=True), approx=True)
        pb = p.astype(jnp.bfloat16)

        o_parts.append(jnp.dot(pb, vh, preferred_element_type=jnp.float32))
        opt_parts.append(jnp.dot(pb, vph, preferred_element_type=jnp.float32))
        p_parts.append(pb)

    o = jnp.concatenate(o_parts, axis=-1)                     # [Nq, H*C]
    opt = jnp.concatenate(opt_parts, axis=-1)                 # [Nq, H*3*Pv]

    # Pair aggregation (inherently query-batched). This orientation streams the
    # H probability rows against z[i] held as the MXU weight tile — no operand
    # transposes; bf16 operands, f32 accumulation.
    P = jnp.stack(p_parts, axis=1)                            # [Nq, H, Nk] bf16
    opair = jnp.einsum('ihk,ikc->ihc', P, z,
                       preferred_element_type=jnp.float32)    # [Nq, H, Cz]
    opair = opair.reshape(Nq, H * Cz)

    # Single lane-dense concatenated output (one unmasked wide store).
    out_ref[...] = jnp.concatenate([o, opt, opair], axis=-1)


def ipa_attention_pallas(q, k, v, qpt, kpt, vpt, z, mask, wbT, bb, head_w,
                         *, H, C, Pq, Pv, block_q=128, inf=1e5):
    B, N, Dq = q.shape
    Cz = z.shape[-1]
    Dpq = qpt.shape[-1]
    Dpv = vpt.shape[-1]
    Dout = H * C + H * Pv * 3 + H * Cz

    bq, vmem_limit = _pick_block_q(N, Cz, B, block_q)
    grid = (B, pl.cdiv(N, bq))

    mask_k = mask.reshape(B, 1, N)
    mask_q = mask.reshape(B, N, 1)
    bf = jnp.bfloat16

    in_specs = [
        pl.BlockSpec(memory_space=pltpu.MemorySpace.SMEM),           # head weights
        pl.BlockSpec(memory_space=pltpu.MemorySpace.SMEM),           # pair-bias bias
        pl.BlockSpec((H, Cz), lambda b, i: (0, 0)),                  # wbT (bf16)
        pl.BlockSpec((None, 1, N), lambda b, i: (b, 0, 0)),          # mask (keys)
        pl.BlockSpec((None, bq, 1), lambda b, i: (b, i, 0)),         # mask (q block)
        pl.BlockSpec((None, bq, Dq), lambda b, i: (b, i, 0)),        # q block
        pl.BlockSpec((None, N, Dq), lambda b, i: (b, 0, 0)),         # k
        pl.BlockSpec((None, N, Dq), lambda b, i: (b, 0, 0)),         # v
        pl.BlockSpec((None, bq, Dpq), lambda b, i: (b, i, 0)),       # q points
        pl.BlockSpec((None, N, Dpq), lambda b, i: (b, 0, 0)),        # k points
        pl.BlockSpec((None, N, Dpv), lambda b, i: (b, 0, 0)),        # v points
        pl.BlockSpec((None, bq, N, Cz), lambda b, i: (b, i, 0, 0)),  # z query-block
    ]
    out_spec = pl.BlockSpec((None, bq, Dout), lambda b, i: (b, i, 0))

    return pl.pallas_call(
        functools.partial(_ipa_attn_kernel,
                          H=H, C=C, Pq=Pq, Pv=Pv, Cz=Cz, inf=inf),
        grid=grid,
        in_specs=in_specs,
        out_specs=out_spec,
        out_shape=jax.ShapeDtypeStruct((B, N, Dout), jnp.float32),
        compiler_params=pltpu.CompilerParams(
            dimension_semantics=("parallel", "parallel"),
            vmem_limit_bytes=vmem_limit),
    )(head_w, bb, wbT.astype(bf), mask_k, mask_q,
      q.astype(bf), k.astype(bf), v.astype(bf),
      qpt.astype(bf), kpt.astype(bf), vpt.astype(bf), z.astype(bf))


# ----------------------------------------------------------------------------
# Rigid-transform helpers (tiny elementwise glue)
# ----------------------------------------------------------------------------
def quat_to_rotmat(q):
    a, b, c, d = q[..., 0], q[..., 1], q[..., 2], q[..., 3]
    row0 = jnp.stack([a * a + b * b - c * c - d * d,
                      2 * (b * c - a * d),
                      2 * (b * d + a * c)], axis=-1)
    row1 = jnp.stack([2 * (b * c + a * d),
                      a * a - b * b + c * c - d * d,
                      2 * (c * d - a * b)], axis=-1)
    row2 = jnp.stack([2 * (b * d - a * c),
                      2 * (c * d + a * b),
                      a * a - b * b - c * c + d * d], axis=-1)
    return jnp.stack([row0, row1, row2], axis=-2)


def quat_multiply_by_vec(quat, vec):
    a, b, c, d = quat[..., 0], quat[..., 1], quat[..., 2], quat[..., 3]
    e, f, g = vec[..., 0], vec[..., 1], vec[..., 2]
    return jnp.stack([
        -(b * e + c * f + d * g),
        a * e + c * g - d * f,
        a * f - b * g + d * e,
        a * g + b * f - c * e,
    ], axis=-1)


def compose_q_update_vec(quats, trans, update):
    q_vec, t_vec = update[..., :3], update[..., 3:]
    new_quats = quats + quat_multiply_by_vec(quats, q_vec)
    new_quats = new_quats / jnp.linalg.norm(new_quats, axis=-1, keepdims=True)
    R = quat_to_rotmat(quats)  # rotation of the *old* rigid (OpenFold convention)
    t_upd = jnp.einsum('bnij,bnj->bni', R, t_vec)
    return new_quats, trans + t_upd


# ----------------------------------------------------------------------------
# IPA forward (glue around the Pallas kernels); returns the pre-output-linear
# concatenated features (the output linear is fused with residual+LN upstream).
# ----------------------------------------------------------------------------
def ipa_forward(p, quats, trans, s, z, mask):
    B, N, _ = s.shape
    H, C, Pq, Pv = p['H'], p['C'], p['Pq'], p['Pv']

    d_q = H * C
    d_kv = 2 * H * C
    d_qp = H * Pq * 3

    # One fused projection: s is read from HBM once, one wide MXU matmul.
    w_all = jnp.concatenate([p['wq'], p['wkv'], p['wqp'], p['wkvp']], axis=1)
    b_all = jnp.concatenate([p['bq'], p['bkv'], p['bqp'], p['bkvp']], axis=0)
    proj = linear_pallas(s, w_all, b_all)

    q = proj[..., :d_q]
    kv = proj[..., d_q:d_q + d_kv].reshape(B, N, H, 2 * C)
    k = kv[..., :C].reshape(B, N, H * C)
    v = kv[..., C:].reshape(B, N, H * C)
    qp_raw = proj[..., d_q + d_kv:d_q + d_kv + d_qp]
    kvp_raw = proj[..., d_q + d_kv + d_qp:]

    R = quat_to_rotmat(quats)                                    # [B, N, 3, 3]

    def to_global_points(raw, npts):
        # torch: split last dim in 3, stack at -1 -> [B,N,H*npts,3], rigid-apply
        pts = raw.reshape(B, N, 3, H * npts).transpose(0, 1, 3, 2)
        pts = jnp.einsum('bnij,bnpj->bnpi', R, pts) + trans[:, :, None, :]
        return pts.reshape(B, N, H, npts, 3)

    q_pts = to_global_points(qp_raw, Pq)
    kv_pts = to_global_points(kvp_raw, Pq + Pv)
    k_pts = kv_pts[..., :Pq, :]
    v_pts = kv_pts[..., Pq:, :]

    # head-major flattened point tensors (no [B,H,N,..] transposes)
    qpt = q_pts.reshape(B, N, H * Pq * 3)
    kpt = k_pts.reshape(B, N, H * Pq * 3)
    vpt = v_pts.reshape(B, N, H * Pv * 3)

    head_w = jax.nn.softplus(p['head_weights']) * math.sqrt(
        1.0 / (3.0 * (Pq * 9.0 / 2.0)))

    out = ipa_attention_pallas(
        q, k, v, qpt, kpt, vpt, z, mask,
        p['wb'].T, p['bb'], head_w, H=H, C=C, Pq=Pq, Pv=Pv)

    d0 = H * C
    d1 = d0 + H * Pv * 3
    o = out[..., :d0]                                            # [B, N, H*C]
    o_pt_g = out[..., d0:d1].reshape(B, N, H, Pv, 3)             # global frame
    o_pair = out[..., d1:]                                       # [B, N, H*Cz]

    # invert_apply: R^T (p - t)
    o_pt_local = jnp.einsum('bnji,bnhpj->bnhpi', R,
                            o_pt_g - trans[:, :, None, None, :])
    o_pt_norm = jnp.sqrt(jnp.sum(o_pt_local ** 2, axis=-1) + 1e-8)
    o_pt_norm = o_pt_norm.reshape(B, N, H * Pv)
    o_pt_xyz = o_pt_local.reshape(B, N, H * Pv, 3)

    cat = jnp.concatenate(
        [o, o_pt_xyz[..., 0], o_pt_xyz[..., 1], o_pt_xyz[..., 2],
         o_pt_norm, o_pair], axis=-1)
    return cat


def multi_ipa_forward(params, quats, trans, s, z, mask):
    # z is loop-invariant: cast to bf16 once so every layer streams half the
    # bytes (the dominant HBM traffic of the whole module).
    z_bf = z.astype(jnp.bfloat16)
    for b in range(params['num_layers']):
        pb = params['ipa'][b]
        cat = ipa_forward(pb, quats, trans, s, z_bf, mask)
        # Fused: output linear -> *mask -> +s -> (dropout = identity) -> LayerNorm
        s = ipa_out_residual_ln(cat, pb['wout'], pb['bout'], s, mask,
                                params['ln_ipa_w'], params['ln_ipa_b'])
        # StructureModuleTransition fused: 3 linears + residual + LayerNorm
        s = transition_pallas(s, params['t_w1'], params['t_b1'],
                              params['t_w2'], params['t_b2'],
                              params['t_w3'], params['t_b3'],
                              params['t_ln_w'], params['t_ln_b'])
        # BackboneUpdate + rigid composition
        upd = linear_pallas(s, params['bb_w'], params['bb_b'])   # [B, N, 6]
        quats, trans = compose_q_update_vec(quats, trans, upd)
    return quats, trans


# ----------------------------------------------------------------------------
# Deterministic parameter init
# ----------------------------------------------------------------------------
def init_params(key, c_s, c_z, c_hidden, c_skip, no_heads, no_qk_points,
                no_v_points, num_layers):
    keys = iter(jax.random.split(key, 256))

    def lin(kin, kout):
        w = 0.1 * jax.random.normal(next(keys), (kin, kout), jnp.float32)
        b = 0.02 * jax.random.normal(next(keys), (kout,), jnp.float32)
        return w, b

    ipa_layers = []
    for _ in range(num_layers):
        wq, bq = lin(c_s, no_heads * c_hidden)
        wkv, bkv = lin(c_s, 2 * no_heads * c_hidden)
        wqp, bqp = lin(c_s, no_heads * no_qk_points * 3)
        wkvp, bkvp = lin(c_s, no_heads * (no_qk_points + no_v_points) * 3)
        wb, bb = lin(c_z, no_heads)
        out_dim = no_heads * (c_hidden + c_z + 4 * no_v_points)
        wout, bout = lin(out_dim, c_s)
        ipa_layers.append(dict(
            H=no_heads, C=c_hidden, Pq=no_qk_points, Pv=no_v_points, c_z=c_z,
            wq=wq, bq=bq, wkv=wkv, bkv=bkv, wqp=wqp, bqp=bqp,
            wkvp=wkvp, bkvp=bkvp, wb=wb, bb=bb, wout=wout, bout=bout,
            head_weights=jnp.zeros((no_heads,), jnp.float32)))

    t_w1, t_b1 = lin(c_s, c_s)
    t_w2, t_b2 = lin(c_s, c_s)
    t_w3, t_b3 = lin(c_s, c_s)
    bb_w, bb_b = lin(c_s, 6)

    return dict(
        num_layers=num_layers,
        ipa=ipa_layers,
        ln_ipa_w=jnp.ones((c_s,), jnp.float32),
        ln_ipa_b=jnp.zeros((c_s,), jnp.float32),
        t_w1=t_w1, t_b1=t_b1, t_w2=t_w2, t_b2=t_b2, t_w3=t_w3, t_b3=t_b3,
        t_ln_w=jnp.ones((c_s,), jnp.float32),
        t_ln_b=jnp.zeros((c_s,), jnp.float32),
        bb_w=bb_w, bb_b=bb_b,
    )


# ----------------------------------------------------------------------------
if __name__ == "__main__":
    B, N = 2, 8
    c_s, c_z, c_hidden, c_skip = 32, 8, 8, 16
    no_heads, no_qk_points, no_v_points, num_layers = 2, 4, 8, 2

    key = jax.random.PRNGKey(0)
    kp, ks, kz, km = jax.random.split(key, 4)

    params = init_params(kp, c_s, c_z, c_hidden, c_skip,
                         no_heads, no_qk_points, no_v_points, num_layers)

    s = jax.random.normal(ks, (B, N, c_s), jnp.float32)
    z = jax.random.normal(kz, (B, N, N, c_z), jnp.float32)
    mask = (jax.random.uniform(km, (B, N)) > 0.2).astype(jnp.float32)

    quats = jnp.tile(jnp.array([1.0, 0.0, 0.0, 0.0], jnp.float32), (B, N, 1))
    trans = jnp.zeros((B, N, 3), jnp.float32)

    q_out, t_out = multi_ipa_forward(params, quats, trans, s, z, mask)
    (q_out, t_out) = jax.block_until_ready((q_out, t_out))

    assert q_out.shape == (B, N, 4) and t_out.shape == (B, N, 3)
    assert bool(jnp.all(jnp.isfinite(q_out))) and bool(jnp.all(jnp.isfinite(t_out)))
    print("KERNEL_OK")
</pallas_src>

<mosaic_0001>
module attributes {stable_mosaic.version = 11 : i64} {
  func.func @_linear_kernel(%arg0: i32, %arg1: memref<16x32xf32, #tpu.memory_space<vmem>>, %arg2: memref<32x144xf32, #tpu.memory_space<vmem>>, %arg3: memref<1x144xf32, #tpu.memory_space<vmem>>, %arg4: memref<16x144xf32, #tpu.memory_space<vmem>>) attributes {dimension_semantics = [#tpu.dimension_semantics<parallel>], iteration_bounds = array<i64: 1>, scalar_prefetch = 0 : i64, scratch_operands = 0 : i64, tpu.core_type = #tpu.core_type<tc>, window_params = [{transform_indices = @transform_0, window_bounds = array<i64: 16, 32>}, {pipeline_mode = #tpu.pipeline_mode<synchronous>, transform_indices = @transform_1, window_bounds = array<i64: 32, 144>}, {pipeline_mode = #tpu.pipeline_mode<synchronous>, transform_indices = @transform_2, window_bounds = array<i64: 1, 144>}, {transform_indices = @transform_3, window_bounds = array<i64: 16, 144>}]} {
    %c0 = arith.constant 0 : index
    %c0_0 = arith.constant 0 : index
    %0 = vector.load %arg1[%c0, %c0_0] : memref<16x32xf32, #tpu.memory_space<vmem>>, vector<16x32xf32>
    %c0_1 = arith.constant 0 : index
    %c0_2 = arith.constant 0 : index
    %1 = vector.load %arg2[%c0_1, %c0_2] : memref<32x144xf32, #tpu.memory_space<vmem>>, vector<32x144xf32>
    %cst = arith.constant dense<0.000000e+00> : vector<16x144xf32>
    %2 = tpu.matmul %0, %1, %cst {dimension_numbers = #tpu.dot_dimension_numbers<[1], [0], [0], [1], [0, 0, 1, 1], [], []>} : vector<16x32xf32>, vector<32x144xf32>, vector<16x144xf32> -> vector<16x144xf32>
    %c0_3 = arith.constant 0 : index
    %c0_4 = arith.constant 0 : index
    %3 = vector.load %arg3[%c0_3, %c0_4] : memref<1x144xf32, #tpu.memory_space<vmem>>, vector<1x144xf32>
    %4 = vector.broadcast %3 : vector<1x144xf32> to vector<16x144xf32>
    %5 = arith.addf %2, %4 : vector<16x144xf32>
    %c0_5 = arith.constant 0 : index
    %c0_6 = arith.constant 0 : index
    %6 = vector.load %arg4[%c0_5, %c0_6] : memref<16x144xf32, #tpu.memory_space<vmem>>, vector<16x144xf32>
    tpu.vector_store %arg4[%c0_5, %c0_6], %5 {strides = array<i32>} : memref<16x144xf32, #tpu.memory_space<vmem>>, vector<16x144xf32>,
    return
  }
  func.func @transform_0(%arg0: i32) -> (i32, i32) {
    %c0_i32 = arith.constant 0 : i32
    %c0_i32_0 = arith.constant 0 : i32
    return %arg0, %c0_i32 : i32, i32
  }
  func.func @transform_1(%arg0: i32) -> (i32, i32) {
    %c0_i32 = arith.constant 0 : i32
    %c0_i32_0 = arith.constant 0 : i32
    %c0_i32_1 = arith.constant 0 : i32
    return %c0_i32, %c0_i32_0 : i32, i32
  }
  func.func @transform_2(%arg0: i32) -> (i32, i32) {
    %c0_i32 = arith.constant 0 : i32
    %c0_i32_0 = arith.constant 0 : i32
    %c0_i32_1 = arith.constant 0 : i32
    return %c0_i32, %c0_i32_0 : i32, i32
  }
  func.func @transform_3(%arg0: i32) -> (i32, i32) {
    %c0_i32 = arith.constant 0 : i32
    %c0_i32_0 = arith.constant 0 : i32
    return %arg0, %c0_i32 : i32, i32
  }
}

</mosaic_0001>

<bundles_post_ra>
// kernel: tpu_custom_call.1
= control target key start
LH: loop header
LB: loop body
LE: loop exit
PB: predicated region body
PF: predicated region fallthrough
CT: control target
= control target key end

     0   :  { %8 = vsyncpa [#allocation3], 0  ;;  %s302_s0 = inlined_call_operand.hbm [shape: f32[16,32], index: 0, kind: input, shape index: {}]   ;;  %s303_s1 = inlined_call_operand.hbm [shape: f32[32,144], index: 1, kind: input, shape index: {}]   ;;  %s304_s2 = inlined_call_operand.vmem [shape: f32[1,144], index: 2, kind: input, shape index: {}]   ;;  %s305_s3 = inlined_call_operand.hbm [shape: f32[16,144], index: 3, kind: output, shape index: {}]  }
   0x1   :  { %9 = vsyncpa [#allocation6], 0 }
   0x2   :  { %10 = vsyncpa [#allocation4], 0  ;;  %s256_s12 = smov [#allocation2]  }
   0x3   :  { %s16_s13 = sshll.u32 %s256_s12, 4  ;;  %s17_s13 = int_to_ptr.vmem [resolvable:$true] %s16_s13 }
   0x4   :  { %s198_s14 = scalar_lea.vmem %s17_s13, 256  ;;  %p203_p1 = scmp.lt.s32.totalorder %s17_s13, %s17_s13 }
   0x5   :  { %p199_p0 = scmp.ne.s32.totalorder %s17_s13, %s198_s14  ;;  %p204_p2 = scmp.lt.s32.totalorder %s198_s14, %s198_s14 }
   0x7   :  { %p205_p3 = por %p204_p2, %p203_p1 }
   0x9   :  { %p206_p4 = pnand %p205_p3, %p199_p0 }
   0xb   :  { %209 = shalt.err (!%p206_p4)
}
   0xc   :  { %s257_s15 = smov 128   ;;  %s258_s16 = smov 8  }
   0xd   :  { %22 = dma.hbm_to_vmem [thread:$0]  %s302_s0, 256, %s17_s13, [#allocation3], %s257_s15, %s257_s15, %s258_s16  }
   0xe   :  { %s259_s19 = smov [#allocation5]  }
   0xf   :  { %s28_s20 = sshll.u32 %s259_s19, 4  ;;  %s29_s20 = int_to_ptr.vmem [resolvable:$true] %s28_s20 }
  0x10   :  { %s218_s21 = scalar_lea.vmem %s29_s20, 1024  ;;  %p223_p6 = scmp.lt.s32.totalorder %s29_s20, %s29_s20 }
  0x11   :  { %p219_p5 = scmp.ne.s32.totalorder %s29_s20, %s218_s21  ;;  %p224_p7 = scmp.lt.s32.totalorder %s218_s21, %s218_s21 }
  0x13   :  { %p225_p8 = por %p224_p7, %p223_p6 }
  0x15   :  { %p226_p9 = pnand %p225_p8, %p219_p5 }
  0x17   :  { %229 = shalt.err (!%p226_p9)
}
  0x18   :  { %s260_s22 = smov 256   ;;  %s261_s23 = smov 16  }
  0x19   :  { %34 = dma.hbm_to_vmem [thread:$0]  %s303_s1, 1024, %s29_s20, [#allocation6], %s260_s22, %s260_s22, %s261_s23  }
  0x1a   :  { %250 = dma.done.wait [#allocation3], 256  }
  0x1b   :  { %251 = vsyncadd [#allocation3], 4294967040 }
  0x1c   :  { %252 = dma.done.wait [#allocation6], 1024  }
  0x1d   :  { %253 = vsyncadd [#allocation6], 4294966272  ;;  %v262_v0 = vmov 0.0   ;;  %v52_v1 = vld [vmem:[#allocation5 + $0x38] sm:$0xff]  ;;  %v51_v2 = vld [vmem:[#allocation5 + $0x30] sm:$0xff]  ;;  %vm65_vm0 = vcmask 261120   ;;  %v55_v11 = vlaneseq }
  0x1e   :  { %136 = vmatprep.mubr.f32.mxu0 %v262_v0  ;;  %142 = vmatprep.mubr.f32.mxu1 %v262_v0  ;;  %v50_v3 = vld [vmem:[#allocation5 + $0x28] sm:$0xff]  ;;  %v49_v4 = vld [vmem:[#allocation5 + $0x20] sm:$0xff]  ;;  %v48_v5 = vld [vmem:[#allocation5 + $0x18] sm:$0xff]  ;;  %s263_s26 = smov [#allocation7]   ;;  %vm150_vm1 = vcmask 130048  }
  0x1f   :  { %96 = vmatprep.subr.mxu0 %v52_v1  ;;  %174 = vmatprep.subr.mxu1 %v52_v1  ;;  %v47_v6 = vld [vmem:[#allocation5 + $0x10] sm:$0xff]  ;;  %v46_v7 = vld [vmem:[#allocation5 + $0x8] sm:$0xff]  ;;  %v45_v8 = vld [vmem:[#allocation5] sm:$0xff]  ;;  %v56_v12 = vshrl.u32 %v55_v11, 7  ;;  %s159_s27 = sshll.u32 %s263_s26, 4  ;;  %s160_s27 = int_to_ptr.vmem [resolvable:$true] %s159_s27 }
  0x20   :  { %97 = vmatpush1.msra.mxu0 %v51_v2  ;;  %178 = vmatpush1.msra.mxu1 %v51_v2  ;;  %v43_v9 = vld [vmem:[#allocation2] sm:$0xff]  ;;  %v44_v10 = vld [vmem:[#allocation2 + $0x8] sm:$0xff]  ;;  %p235_p11 = scmp.lt.s32.totalorder %s160_s27, %s160_s27 }
  0x21   :  { %98 = vmatprep.subr.mxu0 %v50_v3  ;;  %175 = vmatprep.subr.mxu1 %v50_v3  ;;  %v57_v13 = vsub.s32 0, %v56_v12  ;;  %v53_v14 = vld [vmem:[%s304_s2] sm:$0x3]  ;;  %v61_v15 = vsub.s32 1, %v56_v12  ;;  %s230_s2 = scalar_lea.vmem %s160_s27, 512 }
  0x22   :  { %99 = vmatpush1.msra.mxu0 %v49_v4  ;;  %179 = vmatpush1.msra.mxu1 %v49_v4  ;;  %p231_p10 = scmp.ne.s32.totalorder %s160_s27, %s230_s2  ;;  %p236_p12 = scmp.lt.s32.totalorder %s230_s2, %s230_s2 }
  0x23   :  { %100 = vmatprep.subr.mxu0 %v48_v5  ;;  %176 = vmatprep.subr.mxu1 %v48_v5  ;;  %v58_v16 = vrot.slane %v53_v14, %v57_v13  ;;  %v62_v17 = vrot.slane %v53_v14, %v61_v15 }
  0x24   :  { %101 = vmatpush1.msra.mxu0 %v47_v6  ;;  %180 = vmatpush1.msra.mxu1 %v47_v6  ;;  %p237_p13 = por %p236_p12, %p235_p11 }
  0x25   :  { %102 = vmatprep.subr.mxu0 %v46_v7  ;;  %177 = vmatprep.subr.mxu1 %v46_v7 }
  0x26   :  { %103 = vmatpush1.msra.mxu0 %v45_v8  ;;  %181 = vmatpush1.msra.mxu1 %v45_v8  ;;  %p238_p0 = pnand %p237_p13, %p231_p10 }
  0x27   :  { %172 = vmatmul.mubr.msk.f32.vlgmr.msra.gmra.mxu0 %vm65_vm0, %v43_v9  ;;  %173 = vmatmul.mubr.msk.f32.vlgmr.msra.gmra.mxu1 %vm65_vm0, %v44_v10 }
  0xe7   :  { %v138_v18 = vpop.f32.mrf.mxu0  ;;  %v144_v19 = vpop.f32.mrf.mxu1 }
  0xe8   :  { %v139_v20 = vadd.f32 %v138_v18, %v58_v16  ;;  %v145_v21 = vadd.f32 %v144_v19, %v58_v16 }
  0xe9   :  { %v140_v22 = vpop.f32.mrf.mxu0  ;;  %v146_v23 = vpop.f32.mrf.mxu1 }
  0xea   :  { %149 = vst [vmem:[#allocation7] sm:$0xff] %v139_v20  ;;  %152 = vst [vmem:[#allocation7 + $0x10] sm:$0xff] %v145_v21  ;;  %v141_v24 = vadd.f32 %v140_v22, %v62_v17  ;;  %v147_v25 = vadd.f32 %v146_v23, %v62_v17 }
  0xec   :  { %151 = vst.msk [vmem:[#allocation7 + $0x8] sm:$0xff] %vm150_vm1, %v141_v24  ;;  %153 = vst.msk [vmem:[#allocation7 + $0x18] sm:$0xff] %vm150_vm1, %v147_v25 }
  0xed   :  { %241 = shalt.err (!%p238_p0)
}
  0xee   :  { %165 = dma.vmem_to_hbm [thread:$0]  %s160_s27, 512, %s305_s3, [#allocation4], %s260_s22, %s260_s22, %s261_s23  }
  0xef   :  { %254 = dma.done.wait [#allocation4], 512  }
  0xf0   :  { %255 = vsyncadd [#allocation4], 4294966784 }
  0xf1   :  { %169 = vsyncpa [#allocation3], 1 }
  0xf2   :  { %170 = vsyncpa [#allocation6], 1 }
  0xf3   :  { %171 = vsyncpa [#allocation4], 1 }

</bundles_post_ra>
